<compile_context>
chip_gen: v5e
topology: v5e:2x2
jax: 0.10.0
libtpu: 0.0.40
codegen_flags: <defaults>
</compile_context>

<pallas_src>
import jax
import jax.numpy as jnp
from jax.experimental import pallas as pl
from jax.experimental.pallas import tpu as pltpu

N_EMBD = 32
N_HEAD = 4
HEAD_SIZE = N_EMBD // N_HEAD   # 8
FF_HIDDEN = 4 * N_EMBD         # 128
LN_EPS = 1e-5


def _layernorm_f32(x, gamma, beta):
    mu = jnp.mean(x, axis=-1, keepdims=True)
    var = jnp.mean((x - mu) ** 2, axis=-1, keepdims=True)
    return (x - mu) * jax.lax.rsqrt(var + LN_EPS) * gamma + beta


def block_kernel(x_ref,
                 ln1_g_ref, ln1_b_ref,
                 wqkv_ref, wp_ref, bp_ref,
                 ln2_g_ref, ln2_b_ref,
                 w1_ref, b1_ref, w2_ref, b2_ref,
                 o_ref):
    """One grid step processes Bt batch elements (Bt*T rows) of the transformer block."""
    Bt, T, C = x_ref.shape
    rows = Bt * T

    # Load the whole activation tile once; flatten leading dims (layout no-op).
    x = x_ref[...].astype(jnp.float32).reshape(rows, C)

    # ---- LayerNorm 1 (f32 params) ----
    h = _layernorm_f32(x, ln1_g_ref[0], ln1_b_ref[0])

    # ---- Fused Q|K|V projection: one MXU push, bf16 x bf16 -> f32 acc ----
    qkv = jnp.dot(h.astype(jnp.bfloat16), wqkv_ref[...],
                  preferred_element_type=jnp.float32)          # (rows, 3C) f32
    qkv_bf = qkv.astype(jnp.bfloat16)                          # bf16 operands for attention matmuls

    # Causal mask (finite large-negative so fully-masked rows would not NaN).
    row_i = jax.lax.broadcasted_iota(jnp.int32, (T, T), 0)
    col_i = jax.lax.broadcasted_iota(jnp.int32, (T, T), 1)
    causal = (row_i >= col_i)[None]                            # (1, T, T)
    scale = jnp.float32(HEAD_SIZE) ** -0.5
    neg = jnp.float32(-1e30)

    # ---- Multi-head causal attention (static head loop, bf16 MXU operands everywhere). ----
    head_outs = []
    for hd in range(N_HEAD):                                   # static, unrolled
        q_lo = hd * HEAD_SIZE
        k_lo = C + hd * HEAD_SIZE
        v_lo = 2 * C + hd * HEAD_SIZE
        qh = qkv_bf[:, q_lo:q_lo + HEAD_SIZE].reshape(Bt, T, HEAD_SIZE)
        kh = qkv_bf[:, k_lo:k_lo + HEAD_SIZE].reshape(Bt, T, HEAD_SIZE)
        vh = qkv_bf[:, v_lo:v_lo + HEAD_SIZE].reshape(Bt, T, HEAD_SIZE)

        # Block-diagonal per batch element: batched einsum keeps batches separate.
        wei = jnp.einsum('btd,bsd->bts', qh, kh,
                         preferred_element_type=jnp.float32) * scale
        wei = jnp.where(causal, wei, neg)
        wei = wei - jnp.max(wei, axis=-1, keepdims=True)
        p = jnp.exp(wei)
        attn = p / jnp.sum(p, axis=-1, keepdims=True)          # exact softmax denom
        # dropout(attn) is identity in eval mode
        oh = jnp.einsum('bts,bsd->btd', attn.astype(jnp.bfloat16), vh,
                        preferred_element_type=jnp.float32)    # (Bt, T, D)
        head_outs.append(oh.reshape(rows, HEAD_SIZE).astype(jnp.bfloat16))

    # Single K=32 output projection on the lane-concatenated head outputs.
    heads_cat = jnp.concatenate(head_outs, axis=-1)            # (rows, C) bf16
    sa = jnp.dot(heads_cat, wp_ref[...],
                 preferred_element_type=jnp.float32)
    sa = sa + bp_ref[...]                                      # f32 bias
    # dropout(sa) is identity in eval mode
    x2 = x + sa                                                # residual 1

    # ---- LayerNorm 2 + FeedForward ----
    h2 = _layernorm_f32(x2, ln2_g_ref[0], ln2_b_ref[0])
    ff = jnp.dot(h2.astype(jnp.bfloat16), w1_ref[...],
                 preferred_element_type=jnp.float32)           # (rows, 128) lane-dense
    ff = jnp.maximum(ff + b1_ref[...], 0.0)
    ff = jnp.dot(ff.astype(jnp.bfloat16), w2_ref[...],
                 preferred_element_type=jnp.float32)
    ff = ff + b2_ref[...]
    # dropout(ff) is identity in eval mode

    o_ref[...] = (x2 + ff).reshape(Bt, T, C).astype(o_ref.dtype)   # residual 2


def _pick_batch_tile(B, T, vmem_budget_bytes=20 << 20, max_rows=4096):
    """Largest divisor Bt of B whose per-step working set fits the VMEM budget, preferring a grid
    length >= 2 (ideally even) so v7x's two TensorCores both get work on the parallel batch axis."""
    def ws_bytes(bt):
        rows = bt * T
        io = 2 * (2 * rows * N_EMBD * 2)                       # double-buffered bf16 x/out blocks
        f32_act = rows * (9 * N_EMBD + FF_HIDDEN) * 4          # x/h/qkv/sa/x2/h2/ff f32 intermediates
        scores = N_HEAD * bt * T * T * 4                       # live f32 score blocks (static loop)
        return io + f32_act + scores

    divisors = [d for d in range(1, B + 1) if B % d == 0]
    fitting = [d for d in divisors
               if d * T <= max_rows and ws_bytes(d) <= vmem_budget_bytes] or [1]
    bt = max(fitting)
    if B > 1 and B // bt < 2:
        even = [d for d in fitting if B // d >= 2 and (B // d) % 2 == 0]
        any2 = [d for d in fitting if B // d >= 2]
        if even:
            bt = max(even)
        elif any2:
            bt = max(any2)
    return bt


def prepare_params(params, compute_dtype=jnp.bfloat16):
    """One-time weight preparation: fuse QKV and cast matmul weights to bf16.
    LayerNorm params and biases stay f32 (tiny; keeps accuracy)."""
    f32 = jnp.float32
    wqkv = jnp.concatenate([params["wq"], params["wk"], params["wv"]], axis=1)
    return (
        params["ln1_g"].astype(f32), params["ln1_b"].astype(f32),
        wqkv.astype(compute_dtype), params["wp"].astype(compute_dtype), params["bp"].astype(f32),
        params["ln2_g"].astype(f32), params["ln2_b"].astype(f32),
        params["w1"].astype(compute_dtype), params["b1"].astype(f32),
        params["w2"].astype(compute_dtype), params["b2"].astype(f32),
    )


def transformer_block(x, prepared, compute_dtype=jnp.bfloat16):
    B, T, C = x.shape
    assert C == N_EMBD

    x_c = x.astype(compute_dtype)
    Bt = _pick_batch_tile(B, T)
    grid = (B // Bt,)

    def full_spec(arr):
        nd = arr.ndim
        return pl.BlockSpec(arr.shape, lambda b, _nd=nd: (0,) * _nd)

    in_specs = [pl.BlockSpec((Bt, T, C), lambda b: (b, 0, 0))]
    in_specs += [full_spec(w) for w in prepared]

    # Advisory cost estimate for XLA scheduling around the custom call.
    rows = B * T
    flops = (2 * rows * C * (3 * C)                     # fused QKV
             + 4 * B * N_HEAD * T * T * HEAD_SIZE       # attention scores + attn@V
             + 2 * rows * C * C                         # output projection
             + 2 * rows * C * FF_HIDDEN                 # FF up
             + 2 * rows * FF_HIDDEN * C)                # FF down
    transcendentals = B * N_HEAD * T * T + 2 * rows
    bytes_accessed = (2 * x_c.size * x_c.dtype.itemsize
                      + sum(int(w.size) * w.dtype.itemsize for w in prepared))

    return pl.pallas_call(
        block_kernel,
        out_shape=jax.ShapeDtypeStruct((B, T, C), compute_dtype),
        grid_spec=pltpu.PrefetchScalarGridSpec(
            num_scalar_prefetch=0,
            grid=grid,
            in_specs=in_specs,
            out_specs=pl.BlockSpec((Bt, T, C), lambda b: (b, 0, 0)),
        ),
        compiler_params=pltpu.CompilerParams(
            dimension_semantics=("parallel",),
            # Above v5e's 16 MiB default scoped limit, below v7x's 64 MiB physical VMEM.
            vmem_limit_bytes=48 * 1024 * 1024),
        cost_estimate=pl.CostEstimate(flops=flops,
                                      transcendentals=transcendentals,
                                      bytes_accessed=bytes_accessed),
    )(x_c, *prepared)


def init_params(key):
    ks = jax.random.split(key, 8)
    std = 0.02
    return {
        "ln1_g": jnp.ones((1, N_EMBD), jnp.float32),
        "ln1_b": jnp.zeros((1, N_EMBD), jnp.float32),
        # per-head q/k/v projections stacked along output dim: (C, n_head*head_size)
        "wq": std * jax.random.normal(ks[0], (N_EMBD, N_EMBD), jnp.float32),
        "wk": std * jax.random.normal(ks[1], (N_EMBD, N_EMBD), jnp.float32),
        "wv": std * jax.random.normal(ks[2], (N_EMBD, N_EMBD), jnp.float32),
        "wp": std * jax.random.normal(ks[3], (N_EMBD, N_EMBD), jnp.float32),
        "bp": std * jax.random.normal(ks[4], (1, N_EMBD), jnp.float32),
        "ln2_g": jnp.ones((1, N_EMBD), jnp.float32),
        "ln2_b": jnp.zeros((1, N_EMBD), jnp.float32),
        "w1": std * jax.random.normal(ks[5], (N_EMBD, FF_HIDDEN), jnp.float32),
        "b1": std * jax.random.normal(ks[6], (1, FF_HIDDEN), jnp.float32),
        "w2": std * jax.random.normal(ks[7], (FF_HIDDEN, N_EMBD), jnp.float32),
        "b2": jnp.zeros((1, N_EMBD), jnp.float32),
    }


def reference_block(x, p):
    """Pure-JAX f32 reference, mirrors the PyTorch forward in eval mode."""
    h = _layernorm_f32(x, p["ln1_g"][0], p["ln1_b"][0])
    q = h @ p["wq"]
    k = h @ p["wk"]
    v = h @ p["wv"]
    B, T, C = x.shape
    causal = jnp.tril(jnp.ones((T, T), bool))
    outs = []
    for hd in range(N_HEAD):
        sl = slice(hd * HEAD_SIZE, (hd + 1) * HEAD_SIZE)
        wei = (q[..., sl] @ jnp.swapaxes(k[..., sl], -1, -2)) * (HEAD_SIZE ** -0.5)
        wei = jnp.where(causal, wei, -jnp.inf)
        wei = jax.nn.softmax(wei, axis=-1)
        outs.append(wei @ v[..., sl])
    sa = jnp.concatenate(outs, axis=-1) @ p["wp"] + p["bp"][0]
    x2 = x + sa
    h2 = _layernorm_f32(x2, p["ln2_g"][0], p["ln2_b"][0])
    ff = jnp.maximum(h2 @ p["w1"] + p["b1"][0], 0.0) @ p["w2"] + p["b2"][0]
    return x2 + ff


if __name__ == "__main__":
    key = jax.random.PRNGKey(0)
    k_x, k_p = jax.random.split(key)

    B, T = 2, 8   # T <= block_size (256)
    x = jax.random.normal(k_x, (B, T, N_EMBD), jnp.float32)
    params = init_params(k_p)

    # One-time weight fusion / casts hoisted out of the per-call path.
    prepared = prepare_params(params)

    block_fn = jax.jit(transformer_block)
    out = jax.block_until_ready(block_fn(x, prepared))
    ref = jax.block_until_ready(reference_block(x, params))

    assert out.shape == (B, T, N_EMBD)
    out_f32 = out.astype(jnp.float32)
    max_err = float(jnp.max(jnp.abs(out_f32 - ref)))
    # bf16 activations/weights + f32 accumulation -> loosened but tight tolerance
    assert jnp.allclose(out_f32, ref, rtol=2e-2, atol=2e-2), f"mismatch vs reference (max abs err {max_err})"

    print("KERNEL_OK")
</pallas_src>

<mosaic_0001>
module attributes {stable_mosaic.version = 11 : i64} {
  func.func @block_kernel(%arg0: i32, %arg1: memref<1x8x32xbf16, #tpu.memory_space<vmem>>, %arg2: memref<1x32xf32, #tpu.memory_space<vmem>>, %arg3: memref<1x32xf32, #tpu.memory_space<vmem>>, %arg4: memref<32x96xbf16, #tpu.memory_space<vmem>>, %arg5: memref<32x32xbf16, #tpu.memory_space<vmem>>, %arg6: memref<1x32xf32, #tpu.memory_space<vmem>>, %arg7: memref<1x32xf32, #tpu.memory_space<vmem>>, %arg8: memref<1x32xf32, #tpu.memory_space<vmem>>, %arg9: memref<32x128xbf16, #tpu.memory_space<vmem>>, %arg10: memref<1x128xf32, #tpu.memory_space<vmem>>, %arg11: memref<128x32xbf16, #tpu.memory_space<vmem>>, %arg12: memref<1x32xf32, #tpu.memory_space<vmem>>, %arg13: memref<1x8x32xbf16, #tpu.memory_space<vmem>>) attributes {dimension_semantics = [#tpu.dimension_semantics<parallel>], iteration_bounds = array<i64: 2>, scalar_prefetch = 0 : i64, scratch_operands = 0 : i64, tpu.core_type = #tpu.core_type<tc>, window_params = [{transform_indices = @transform_0, window_bounds = array<i64: 1, 8, 32>}, {pipeline_mode = #tpu.pipeline_mode<synchronous>, transform_indices = @transform_1, window_bounds = array<i64: 1, 32>}, {pipeline_mode = #tpu.pipeline_mode<synchronous>, transform_indices = @transform_2, window_bounds = array<i64: 1, 32>}, {pipeline_mode = #tpu.pipeline_mode<synchronous>, transform_indices = @transform_3, window_bounds = array<i64: 32, 96>}, {pipeline_mode = #tpu.pipeline_mode<synchronous>, transform_indices = @transform_4, window_bounds = array<i64: 32, 32>}, {pipeline_mode = #tpu.pipeline_mode<synchronous>, transform_indices = @transform_5, window_bounds = array<i64: 1, 32>}, {pipeline_mode = #tpu.pipeline_mode<synchronous>, transform_indices = @transform_6, window_bounds = array<i64: 1, 32>}, {pipeline_mode = #tpu.pipeline_mode<synchronous>, transform_indices = @transform_7, window_bounds = array<i64: 1, 32>}, {pipeline_mode = #tpu.pipeline_mode<synchronous>, transform_indices = @transform_8, window_bounds = array<i64: 32, 128>}, {pipeline_mode = #tpu.pipeline_mode<synchronous>, transform_indices = @transform_9, window_bounds = array<i64: 1, 128>}, {pipeline_mode = #tpu.pipeline_mode<synchronous>, transform_indices = @transform_10, window_bounds = array<i64: 128, 32>}, {pipeline_mode = #tpu.pipeline_mode<synchronous>, transform_indices = @transform_11, window_bounds = array<i64: 1, 32>}, {transform_indices = @transform_12, window_bounds = array<i64: 1, 8, 32>}]} {
    %c0 = arith.constant 0 : index
    %c0_0 = arith.constant 0 : index
    %c0_1 = arith.constant 0 : index
    %0 = vector.load %arg1[%c0, %c0_0, %c0_1] : memref<1x8x32xbf16, #tpu.memory_space<vmem>>, vector<1x8x32xbf16>
    %1 = arith.extf %0 : vector<1x8x32xbf16> to vector<1x8x32xf32>
    %2 = vector.shape_cast %1 : vector<1x8x32xf32> to vector<8x32xf32>
    %c0_2 = arith.constant 0 : index
    %c0_3 = arith.constant 0 : index
    %3 = vector.load %arg2[%c0_2, %c0_3] : memref<1x32xf32, #tpu.memory_space<vmem>>, vector<1x32xf32>
    %4 = vector.shape_cast %3 : vector<1x32xf32> to vector<32xf32>
    %c0_4 = arith.constant 0 : index
    %c0_5 = arith.constant 0 : index
    %5 = vector.load %arg3[%c0_4, %c0_5] : memref<1x32xf32, #tpu.memory_space<vmem>>, vector<1x32xf32>
    %6 = vector.shape_cast %5 : vector<1x32xf32> to vector<32xf32>
    %cst = arith.constant dense<0.000000e+00> : vector<8xf32>
    %7 = vector.multi_reduction <add>, %2, %cst [1] : vector<8x32xf32> to vector<8xf32>
    %8 = vector.shape_cast %7 : vector<8xf32> to vector<8x1xf32>
    %cst_6 = arith.constant 3.200000e+01 : f32
    %9 = vector.broadcast %cst_6 : f32 to vector<8x1xf32>
    %10 = arith.divf %8, %9 : vector<8x1xf32>
    %11 = vector.broadcast %10 : vector<8x1xf32> to vector<8x32xf32>
    %12 = arith.subf %2, %11 : vector<8x32xf32>
    %13 = arith.mulf %12, %12 : vector<8x32xf32>
    %cst_7 = arith.constant dense<0.000000e+00> : vector<8xf32>
    %14 = vector.multi_reduction <add>, %13, %cst_7 [1] : vector<8x32xf32> to vector<8xf32>
    %15 = vector.shape_cast %14 : vector<8xf32> to vector<8x1xf32>
    %cst_8 = arith.constant 3.200000e+01 : f32
    %16 = vector.broadcast %cst_8 : f32 to vector<8x1xf32>
    %17 = arith.divf %15, %16 : vector<8x1xf32>
    %18 = vector.broadcast %10 : vector<8x1xf32> to vector<8x32xf32>
    %19 = arith.subf %2, %18 : vector<8x32xf32>
    %cst_9 = arith.constant 9.99999974E-6 : f32
    %20 = vector.broadcast %cst_9 : f32 to vector<8x1xf32>
    %21 = arith.addf %17, %20 : vector<8x1xf32>
    %22 = math.rsqrt %21 : vector<8x1xf32>
    %23 = vector.broadcast %22 : vector<8x1xf32> to vector<8x32xf32>
    %24 = arith.mulf %19, %23 : vector<8x32xf32>
    %25 = vector.shape_cast %4 : vector<32xf32> to vector<1x32xf32>
    %26 = vector.broadcast %25 : vector<1x32xf32> to vector<8x32xf32>
    %27 = arith.mulf %24, %26 : vector<8x32xf32>
    %28 = vector.shape_cast %6 : vector<32xf32> to vector<1x32xf32>
    %29 = vector.broadcast %28 : vector<1x32xf32> to vector<8x32xf32>
    %30 = arith.addf %27, %29 : vector<8x32xf32>
    %31 = arith.truncf %30 : vector<8x32xf32> to vector<8x32xbf16>
    %c0_10 = arith.constant 0 : index
    %c0_11 = arith.constant 0 : index
    %32 = vector.load %arg4[%c0_10, %c0_11] : memref<32x96xbf16, #tpu.memory_space<vmem>>, vector<32x96xbf16>
    %cst_12 = arith.constant dense<0.000000e+00> : vector<8x96xf32>
    %33 = tpu.matmul %31, %32, %cst_12 {dimension_numbers = #tpu.dot_dimension_numbers<[1], [0], [0], [1], [0, 0, 1, 1], [], []>} : vector<8x32xbf16>, vector<32x96xbf16>, vector<8x96xf32> -> vector<8x96xf32>
    %34 = arith.truncf %33 : vector<8x96xf32> to vector<8x96xbf16>
    %35 = tpu.iota {dimensions = array<i32: 0>} : vector<8x8xi32>
    %36 = tpu.iota {dimensions = array<i32: 1>} : vector<8x8xi32>
    %37 = arith.cmpi sge, %35, %36 : vector<8x8xi32>
    %38 = vector.shape_cast %37 : vector<8x8xi1> to vector<1x8x8xi1>
    %cst_13 = arith.constant 8.000000e+00 : f32
    %cst_14 = arith.constant -5.000000e-01 : f32
    %39 = math.powf %cst_13, %cst_14 : f32
    %40 = vector.extract_strided_slice %34 {offsets = [0, 0], sizes = [8, 8], strides = [1, 1]} : vector<8x96xbf16> to vector<8x8xbf16>
    %41 = vector.shape_cast %40 : vector<8x8xbf16> to vector<1x8x8xbf16>
    %42 = vector.extract_strided_slice %34 {offsets = [0, 32], sizes = [8, 8], strides = [1, 1]} : vector<8x96xbf16> to vector<8x8xbf16>
    %43 = vector.shape_cast %42 : vector<8x8xbf16> to vector<1x8x8xbf16>
    %44 = vector.extract_strided_slice %34 {offsets = [0, 64], sizes = [8, 8], strides = [1, 1]} : vector<8x96xbf16> to vector<8x8xbf16>
    %45 = vector.shape_cast %44 : vector<8x8xbf16> to vector<1x8x8xbf16>
    "tpu.trace_start"() <{level = 10 : i32, message = "btd,bsd->bts"}> : () -> ()
    %cst_15 = arith.constant dense<0.000000e+00> : vector<1x8x8xf32>
    %46 = tpu.matmul %41, %43, %cst_15 {dimension_numbers = #tpu.dot_dimension_numbers<[2], [2], [1], [1], [0, 0, 0, 1, 1, 1], [0], [0]>} : vector<1x8x8xbf16>, vector<1x8x8xbf16>, vector<1x8x8xf32> -> vector<1x8x8xf32>
    "tpu.trace_stop"() : () -> ()
    %47 = vector.broadcast %39 : f32 to vector<1x8x8xf32>
    %48 = arith.mulf %46, %47 : vector<1x8x8xf32>
    %cst_16 = arith.constant -1.000000e+30 : f32
    %49 = vector.broadcast %cst_16 : f32 to vector<1x8x8xf32>
    %50 = arith.select %38, %48, %49 : vector<1x8x8xi1>, vector<1x8x8xf32>
    %cst_17 = arith.constant dense<0xFF800000> : vector<1x8xf32>
    %51 = vector.multi_reduction <maximumf>, %50, %cst_17 [2] : vector<1x8x8xf32> to vector<1x8xf32>
    %52 = vector.shape_cast %51 : vector<1x8xf32> to vector<1x8x1xf32>
    %53 = vector.broadcast %52 : vector<1x8x1xf32> to vector<1x8x8xf32>
    %54 = arith.subf %50, %53 : vector<1x8x8xf32>
    %55 = math.exp %54 : vector<1x8x8xf32>
    %cst_18 = arith.constant dense<0.000000e+00> : vector<1x8xf32>
    %56 = vector.multi_reduction <add>, %55, %cst_18 [2] : vector<1x8x8xf32> to vector<1x8xf32>
    %57 = vector.shape_cast %56 : vector<1x8xf32> to vector<1x8x1xf32>
    %58 = vector.broadcast %57 : vector<1x8x1xf32> to vector<1x8x8xf32>
    %59 = arith.divf %55, %58 : vector<1x8x8xf32>
    %60 = arith.truncf %59 : vector<1x8x8xf32> to vector<1x8x8xbf16>
    "tpu.trace_start"() <{level = 10 : i32, message = "bts,bsd->btd"}> : () -> ()
    %cst_19 = arith.constant dense<0.000000e+00> : vector<1x8x8xf32>
    %61 = tpu.matmul %60, %45, %cst_19 {dimension_numbers = #tpu.dot_dimension_numbers<[2], [1], [1], [2], [0, 0, 0, 1, 1, 2], [0], [0]>} : vector<1x8x8xbf16>, vector<1x8x8xbf16>, vector<1x8x8xf32> -> vector<1x8x8xf32>
    "tpu.trace_stop"() : () -> ()
    %62 = vector.shape_cast %61 : vector<1x8x8xf32> to vector<8x8xf32>
    %63 = arith.truncf %62 : vector<8x8xf32> to vector<8x8xbf16>
    %64 = vector.extract_strided_slice %34 {offsets = [0, 8], sizes = [8, 8], strides = [1, 1]} : vector<8x96xbf16> to vector<8x8xbf16>
    %65 = vector.shape_cast %64 : vector<8x8xbf16> to vector<1x8x8xbf16>
    %66 = vector.extract_strided_slice %34 {offsets = [0, 40], sizes = [8, 8], strides = [1, 1]} : vector<8x96xbf16> to vector<8x8xbf16>
    %67 = vector.shape_cast %66 : vector<8x8xbf16> to vector<1x8x8xbf16>
    %68 = vector.extract_strided_slice %34 {offsets = [0, 72], sizes = [8, 8], strides = [1, 1]} : vector<8x96xbf16> to vector<8x8xbf16>
    %69 = vector.shape_cast %68 : vector<8x8xbf16> to vector<1x8x8xbf16>
    "tpu.trace_start"() <{level = 10 : i32, message = "btd,bsd->bts"}> : () -> ()
    %cst_20 = arith.constant dense<0.000000e+00> : vector<1x8x8xf32>
    %70 = tpu.matmul %65, %67, %cst_20 {dimension_numbers = #tpu.dot_dimension_numbers<[2], [2], [1], [1], [0, 0, 0, 1, 1, 1], [0], [0]>} : vector<1x8x8xbf16>, vector<1x8x8xbf16>, vector<1x8x8xf32> -> vector<1x8x8xf32>
    "tpu.trace_stop"() : () -> ()
    %71 = vector.broadcast %39 : f32 to vector<1x8x8xf32>
    %72 = arith.mulf %70, %71 : vector<1x8x8xf32>
    %cst_21 = arith.constant -1.000000e+30 : f32
    %73 = vector.broadcast %cst_21 : f32 to vector<1x8x8xf32>
    %74 = arith.select %38, %72, %73 : vector<1x8x8xi1>, vector<1x8x8xf32>
    %cst_22 = arith.constant dense<0xFF800000> : vector<1x8xf32>
    %75 = vector.multi_reduction <maximumf>, %74, %cst_22 [2] : vector<1x8x8xf32> to vector<1x8xf32>
    %76 = vector.shape_cast %75 : vector<1x8xf32> to vector<1x8x1xf32>
    %77 = vector.broadcast %76 : vector<1x8x1xf32> to vector<1x8x8xf32>
    %78 = arith.subf %74, %77 : vector<1x8x8xf32>
    %79 = math.exp %78 : vector<1x8x8xf32>
    %cst_23 = arith.constant dense<0.000000e+00> : vector<1x8xf32>
    %80 = vector.multi_reduction <add>, %79, %cst_23 [2] : vector<1x8x8xf32> to vector<1x8xf32>
    %81 = vector.shape_cast %80 : vector<1x8xf32> to vector<1x8x1xf32>
    %82 = vector.broadcast %81 : vector<1x8x1xf32> to vector<1x8x8xf32>
    %83 = arith.divf %79, %82 : vector<1x8x8xf32>
    %84 = arith.truncf %83 : vector<1x8x8xf32> to vector<1x8x8xbf16>
    "tpu.trace_start"() <{level = 10 : i32, message = "bts,bsd->btd"}> : () -> ()
    %cst_24 = arith.constant dense<0.000000e+00> : vector<1x8x8xf32>
    %85 = tpu.matmul %84, %69, %cst_24 {dimension_numbers = #tpu.dot_dimension_numbers<[2], [1], [1], [2], [0, 0, 0, 1, 1, 2], [0], [0]>} : vector<1x8x8xbf16>, vector<1x8x8xbf16>, vector<1x8x8xf32> -> vector<1x8x8xf32>
    "tpu.trace_stop"() : () -> ()
    %86 = vector.shape_cast %85 : vector<1x8x8xf32> to vector<8x8xf32>
    %87 = arith.truncf %86 : vector<8x8xf32> to vector<8x8xbf16>
    %88 = vector.extract_strided_slice %34 {offsets = [0, 16], sizes = [8, 8], strides = [1, 1]} : vector<8x96xbf16> to vector<8x8xbf16>
    %89 = vector.shape_cast %88 : vector<8x8xbf16> to vector<1x8x8xbf16>
    %90 = vector.extract_strided_slice %34 {offsets = [0, 48], sizes = [8, 8], strides = [1, 1]} : vector<8x96xbf16> to vector<8x8xbf16>
    %91 = vector.shape_cast %90 : vector<8x8xbf16> to vector<1x8x8xbf16>
    %92 = vector.extract_strided_slice %34 {offsets = [0, 80], sizes = [8, 8], strides = [1, 1]} : vector<8x96xbf16> to vector<8x8xbf16>
    %93 = vector.shape_cast %92 : vector<8x8xbf16> to vector<1x8x8xbf16>
    "tpu.trace_start"() <{level = 10 : i32, message = "btd,bsd->bts"}> : () -> ()
    %cst_25 = arith.constant dense<0.000000e+00> : vector<1x8x8xf32>
    %94 = tpu.matmul %89, %91, %cst_25 {dimension_numbers = #tpu.dot_dimension_numbers<[2], [2], [1], [1], [0, 0, 0, 1, 1, 1], [0], [0]>} : vector<1x8x8xbf16>, vector<1x8x8xbf16>, vector<1x8x8xf32> -> vector<1x8x8xf32>
    "tpu.trace_stop"() : () -> ()
    %95 = vector.broadcast %39 : f32 to vector<1x8x8xf32>
    %96 = arith.mulf %94, %95 : vector<1x8x8xf32>
    %cst_26 = arith.constant -1.000000e+30 : f32
    %97 = vector.broadcast %cst_26 : f32 to vector<1x8x8xf32>
    %98 = arith.select %38, %96, %97 : vector<1x8x8xi1>, vector<1x8x8xf32>
    %cst_27 = arith.constant dense<0xFF800000> : vector<1x8xf32>
    %99 = vector.multi_reduction <maximumf>, %98, %cst_27 [2] : vector<1x8x8xf32> to vector<1x8xf32>
    %100 = vector.shape_cast %99 : vector<1x8xf32> to vector<1x8x1xf32>
    %101 = vector.broadcast %100 : vector<1x8x1xf32> to vector<1x8x8xf32>
    %102 = arith.subf %98, %101 : vector<1x8x8xf32>
    %103 = math.exp %102 : vector<1x8x8xf32>
    %cst_28 = arith.constant dense<0.000000e+00> : vector<1x8xf32>
    %104 = vector.multi_reduction <add>, %103, %cst_28 [2] : vector<1x8x8xf32> to vector<1x8xf32>
    %105 = vector.shape_cast %104 : vector<1x8xf32> to vector<1x8x1xf32>
    %106 = vector.broadcast %105 : vector<1x8x1xf32> to vector<1x8x8xf32>
    %107 = arith.divf %103, %106 : vector<1x8x8xf32>
    %108 = arith.truncf %107 : vector<1x8x8xf32> to vector<1x8x8xbf16>
    "tpu.trace_start"() <{level = 10 : i32, message = "bts,bsd->btd"}> : () -> ()
    %cst_29 = arith.constant dense<0.000000e+00> : vector<1x8x8xf32>
    %109 = tpu.matmul %108, %93, %cst_29 {dimension_numbers = #tpu.dot_dimension_numbers<[2], [1], [1], [2], [0, 0, 0, 1, 1, 2], [0], [0]>} : vector<1x8x8xbf16>, vector<1x8x8xbf16>, vector<1x8x8xf32> -> vector<1x8x8xf32>
    "tpu.trace_stop"() : () -> ()
    %110 = vector.shape_cast %109 : vector<1x8x8xf32> to vector<8x8xf32>
    %111 = arith.truncf %110 : vector<8x8xf32> to vector<8x8xbf16>
    %112 = vector.extract_strided_slice %34 {offsets = [0, 24], sizes = [8, 8], strides = [1, 1]} : vector<8x96xbf16> to vector<8x8xbf16>
    %113 = vector.shape_cast %112 : vector<8x8xbf16> to vector<1x8x8xbf16>
    %114 = vector.extract_strided_slice %34 {offsets = [0, 56], sizes = [8, 8], strides = [1, 1]} : vector<8x96xbf16> to vector<8x8xbf16>
    %115 = vector.shape_cast %114 : vector<8x8xbf16> to vector<1x8x8xbf16>
    %116 = vector.extract_strided_slice %34 {offsets = [0, 88], sizes = [8, 8], strides = [1, 1]} : vector<8x96xbf16> to vector<8x8xbf16>
    %117 = vector.shape_cast %116 : vector<8x8xbf16> to vector<1x8x8xbf16>
    "tpu.trace_start"() <{level = 10 : i32, message = "btd,bsd->bts"}> : () -> ()
    %cst_30 = arith.constant dense<0.000000e+00> : vector<1x8x8xf32>
    %118 = tpu.matmul %113, %115, %cst_30 {dimension_numbers = #tpu.dot_dimension_numbers<[2], [2], [1], [1], [0, 0, 0, 1, 1, 1], [0], [0]>} : vector<1x8x8xbf16>, vector<1x8x8xbf16>, vector<1x8x8xf32> -> vector<1x8x8xf32>
    "tpu.trace_stop"() : () -> ()
    %119 = vector.broadcast %39 : f32 to vector<1x8x8xf32>
    %120 = arith.mulf %118, %119 : vector<1x8x8xf32>
    %cst_31 = arith.constant -1.000000e+30 : f32
    %121 = vector.broadcast %cst_31 : f32 to vector<1x8x8xf32>
    %122 = arith.select %38, %120, %121 : vector<1x8x8xi1>, vector<1x8x8xf32>
    %cst_32 = arith.constant dense<0xFF800000> : vector<1x8xf32>
    %123 = vector.multi_reduction <maximumf>, %122, %cst_32 [2] : vector<1x8x8xf32> to vector<1x8xf32>
    %124 = vector.shape_cast %123 : vector<1x8xf32> to vector<1x8x1xf32>
    %125 = vector.broadcast %124 : vector<1x8x1xf32> to vector<1x8x8xf32>
    %126 = arith.subf %122, %125 : vector<1x8x8xf32>
    %127 = math.exp %126 : vector<1x8x8xf32>
    %cst_33 = arith.constant dense<0.000000e+00> : vector<1x8xf32>
    %128 = vector.multi_reduction <add>, %127, %cst_33 [2] : vector<1x8x8xf32> to vector<1x8xf32>
    %129 = vector.shape_cast %128 : vector<1x8xf32> to vector<1x8x1xf32>
    %130 = vector.broadcast %129 : vector<1x8x1xf32> to vector<1x8x8xf32>
    %131 = arith.divf %127, %130 : vector<1x8x8xf32>
    %132 = arith.truncf %131 : vector<1x8x8xf32> to vector<1x8x8xbf16>
    "tpu.trace_start"() <{level = 10 : i32, message = "bts,bsd->btd"}> : () -> ()
    %cst_34 = arith.constant dense<0.000000e+00> : vector<1x8x8xf32>
    %133 = tpu.matmul %132, %117, %cst_34 {dimension_numbers = #tpu.dot_dimension_numbers<[2], [1], [1], [2], [0, 0, 0, 1, 1, 2], [0], [0]>} : vector<1x8x8xbf16>, vector<1x8x8xbf16>, vector<1x8x8xf32> -> vector<1x8x8xf32>
    "tpu.trace_stop"() : () -> ()
    %134 = vector.shape_cast %133 : vector<1x8x8xf32> to vector<8x8xf32>
    %135 = arith.truncf %134 : vector<8x8xf32> to vector<8x8xbf16>
    %136 = tpu.concatenate %63, %87, %111, %135 in 1 : vector<8x8xbf16>, vector<8x8xbf16>, vector<8x8xbf16>, vector<8x8xbf16> -> vector<8x32xbf16>
    %c0_35 = arith.constant 0 : index
    %c0_36 = arith.constant 0 : index
    %137 = vector.load %arg5[%c0_35, %c0_36] : memref<32x32xbf16, #tpu.memory_space<vmem>>, vector<32x32xbf16>
    %cst_37 = arith.constant dense<0.000000e+00> : vector<8x32xf32>
    %138 = tpu.matmul %136, %137, %cst_37 {dimension_numbers = #tpu.dot_dimension_numbers<[1], [0], [0], [1], [0, 0, 1, 1], [], []>} : vector<8x32xbf16>, vector<32x32xbf16>, vector<8x32xf32> -> vector<8x32xf32>
    %c0_38 = arith.constant 0 : index
    %c0_39 = arith.constant 0 : index
    %139 = vector.load %arg6[%c0_38, %c0_39] : memref<1x32xf32, #tpu.memory_space<vmem>>, vector<1x32xf32>
    %140 = vector.broadcast %139 : vector<1x32xf32> to vector<8x32xf32>
    %141 = arith.addf %138, %140 : vector<8x32xf32>
    %142 = arith.addf %2, %141 : vector<8x32xf32>
    %c0_40 = arith.constant 0 : index
    %c0_41 = arith.constant 0 : index
    %143 = vector.load %arg7[%c0_40, %c0_41] : memref<1x32xf32, #tpu.memory_space<vmem>>, vector<1x32xf32>
    %144 = vector.shape_cast %143 : vector<1x32xf32> to vector<32xf32>
    %c0_42 = arith.constant 0 : index
    %c0_43 = arith.constant 0 : index
    %145 = vector.load %arg8[%c0_42, %c0_43] : memref<1x32xf32, #tpu.memory_space<vmem>>, vector<1x32xf32>
    %146 = vector.shape_cast %145 : vector<1x32xf32> to vector<32xf32>
    %cst_44 = arith.constant dense<0.000000e+00> : vector<8xf32>
    %147 = vector.multi_reduction <add>, %142, %cst_44 [1] : vector<8x32xf32> to vector<8xf32>
    %148 = vector.shape_cast %147 : vector<8xf32> to vector<8x1xf32>
    %cst_45 = arith.constant 3.200000e+01 : f32
    %149 = vector.broadcast %cst_45 : f32 to vector<8x1xf32>
    %150 = arith.divf %148, %149 : vector<8x1xf32>
    %151 = vector.broadcast %150 : vector<8x1xf32> to vector<8x32xf32>
    %152 = arith.subf %142, %151 : vector<8x32xf32>
    %153 = arith.mulf %152, %152 : vector<8x32xf32>
    %cst_46 = arith.constant dense<0.000000e+00> : vector<8xf32>
    %154 = vector.multi_reduction <add>, %153, %cst_46 [1] : vector<8x32xf32> to vector<8xf32>
    %155 = vector.shape_cast %154 : vector<8xf32> to vector<8x1xf32>
    %cst_47 = arith.constant 3.200000e+01 : f32
    %156 = vector.broadcast %cst_47 : f32 to vector<8x1xf32>
    %157 = arith.divf %155, %156 : vector<8x1xf32>
    %158 = vector.broadcast %150 : vector<8x1xf32> to vector<8x32xf32>
    %159 = arith.subf %142, %158 : vector<8x32xf32>
    %cst_48 = arith.constant 9.99999974E-6 : f32
    %160 = vector.broadcast %cst_48 : f32 to vector<8x1xf32>
    %161 = arith.addf %157, %160 : vector<8x1xf32>
    %162 = math.rsqrt %161 : vector<8x1xf32>
    %163 = vector.broadcast %162 : vector<8x1xf32> to vector<8x32xf32>
    %164 = arith.mulf %159, %163 : vector<8x32xf32>
    %165 = vector.shape_cast %144 : vector<32xf32> to vector<1x32xf32>
    %166 = vector.broadcast %165 : vector<1x32xf32> to vector<8x32xf32>
    %167 = arith.mulf %164, %166 : vector<8x32xf32>
    %168 = vector.shape_cast %146 : vector<32xf32> to vector<1x32xf32>
    %169 = vector.broadcast %168 : vector<1x32xf32> to vector<8x32xf32>
    %170 = arith.addf %167, %169 : vector<8x32xf32>
    %171 = arith.truncf %170 : vector<8x32xf32> to vector<8x32xbf16>
    %c0_49 = arith.constant 0 : index
    %c0_50 = arith.constant 0 : index
    %172 = vector.load %arg9[%c0_49, %c0_50] : memref<32x128xbf16, #tpu.memory_space<vmem>>, vector<32x128xbf16>
    %cst_51 = arith.constant dense<0.000000e+00> : vector<8x128xf32>
    %173 = tpu.matmul %171, %172, %cst_51 {dimension_numbers = #tpu.dot_dimension_numbers<[1], [0], [0], [1], [0, 0, 1, 1], [], []>} : vector<8x32xbf16>, vector<32x128xbf16>, vector<8x128xf32> -> vector<8x128xf32>
    %c0_52 = arith.constant 0 : index
    %c0_53 = arith.constant 0 : index
    %174 = vector.load %arg10[%c0_52, %c0_53] : memref<1x128xf32, #tpu.memory_space<vmem>>, vector<1x128xf32>
    %175 = vector.broadcast %174 : vector<1x128xf32> to vector<8x128xf32>
    %176 = arith.addf %173, %175 : vector<8x128xf32>
    %cst_54 = arith.constant 0.000000e+00 : f32
    %177 = vector.broadcast %cst_54 : f32 to vector<8x128xf32>
    %178 = arith.maximumf %176, %177 : vector<8x128xf32>
    %179 = arith.truncf %178 : vector<8x128xf32> to vector<8x128xbf16>
    %c0_55 = arith.constant 0 : index
    %c0_56 = arith.constant 0 : index
    %180 = vector.load %arg11[%c0_55, %c0_56] : memref<128x32xbf16, #tpu.memory_space<vmem>>, vector<128x32xbf16>
    %cst_57 = arith.constant dense<0.000000e+00> : vector<8x32xf32>
    %181 = tpu.matmul %179, %180, %cst_57 {dimension_numbers = #tpu.dot_dimension_numbers<[1], [0], [0], [1], [0, 0, 1, 1], [], []>} : vector<8x128xbf16>, vector<128x32xbf16>, vector<8x32xf32> -> vector<8x32xf32>
    %c0_58 = arith.constant 0 : index
    %c0_59 = arith.constant 0 : index
    %182 = vector.load %arg12[%c0_58, %c0_59] : memref<1x32xf32, #tpu.memory_space<vmem>>, vector<1x32xf32>
    %183 = vector.broadcast %182 : vector<1x32xf32> to vector<8x32xf32>
    %184 = arith.addf %181, %183 : vector<8x32xf32>
    %185 = arith.addf %142, %184 : vector<8x32xf32>
    %186 = vector.shape_cast %185 : vector<8x32xf32> to vector<1x8x32xf32>
    %187 = arith.truncf %186 : vector<1x8x32xf32> to vector<1x8x32xbf16>
    %c0_60 = arith.constant 0 : index
    %c0_61 = arith.constant 0 : index
    %c0_62 = arith.constant 0 : index
    %188 = vector.load %arg13[%c0_60, %c0_61, %c0_62] : memref<1x8x32xbf16, #tpu.memory_space<vmem>>, vector<1x8x32xbf16>
    tpu.vector_store %arg13[%c0_60, %c0_61, %c0_62], %187 {strides = array<i32>} : memref<1x8x32xbf16, #tpu.memory_space<vmem>>, vector<1x8x32xbf16>,
    return
  }
  func.func @transform_0(%arg0: i32) -> (i32, i32, i32) {
    %c0_i32 = arith.constant 0 : i32
    %c0_i32_0 = arith.constant 0 : i32
    %c0_i32_1 = arith.constant 0 : i32
    return %arg0, %c0_i32, %c0_i32_0 : i32, i32, i32
  }
  func.func @transform_1(%arg0: i32) -> (i32, i32) {
    %c0_i32 = arith.constant 0 : i32
    %c0_i32_0 = arith.constant 0 : i32
    %c0_i32_1 = arith.constant 0 : i32
    return %c0_i32, %c0_i32_0 : i32, i32
  }
  func.func @transform_2(%arg0: i32) -> (i32, i32) {
    %c0_i32 = arith.constant 0 : i32
    %c0_i32_0 = arith.constant 0 : i32
    %c0_i32_1 = arith.constant 0 : i32
    return %c0_i32, %c0_i32_0 : i32, i32
  }
  func.func @transform_3(%arg0: i32) -> (i32, i32) {
    %c0_i32 = arith.constant 0 : i32
    %c0_i32_0 = arith.constant 0 : i32
    %c0_i32_1 = arith.constant 0 : i32
    return %c0_i32, %c0_i32_0 : i32, i32
  }
  func.func @transform_4(%arg0: i32) -> (i32, i32) {
    %c0_i32 = arith.constant 0 : i32
    %c0_i32_0 = arith.constant 0 : i32
    %c0_i32_1 = arith.constant 0 : i32
    return %c0_i32, %c0_i32_0 : i32, i32
  }
  func.func @transform_5(%arg0: i32) -> (i32, i32) {
    %c0_i32 = arith.constant 0 : i32
    %c0_i32_0 = arith.constant 0 : i32
    %c0_i32_1 = arith.constant 0 : i32
    return %c0_i32, %c0_i32_0 : i32, i32
  }
  func.func @transform_6(%arg0: i32) -> (i32, i32) {
    %c0_i32 = arith.constant 0 : i32
    %c0_i32_0 = arith.constant 0 : i32
    %c0_i32_1 = arith.constant 0 : i32
    return %c0_i32, %c0_i32_0 : i32, i32
  }
  func.func @transform_7(%arg0: i32) -> (i32, i32) {
    %c0_i32 = arith.constant 0 : i32
    %c0_i32_0 = arith.constant 0 : i32
    %c0_i32_1 = arith.constant 0 : i32
    return %c0_i32, %c0_i32_0 : i32, i32
  }
  func.func @transform_8(%arg0: i32) -> (i32, i32) {
    %c0_i32 = arith.constant 0 : i32
    %c0_i32_0 = arith.constant 0 : i32
    %c0_i32_1 = arith.constant 0 : i32
    return %c0_i32, %c0_i32_0 : i32, i32
  }
  func.func @transform_9(%arg0: i32) -> (i32, i32) {
    %c0_i32 = arith.constant 0 : i32
    %c0_i32_0 = arith.constant 0 : i32
    %c0_i32_1 = arith.constant 0 : i32
    return %c0_i32, %c0_i32_0 : i32, i32
  }
  func.func @transform_10(%arg0: i32) -> (i32, i32) {
    %c0_i32 = arith.constant 0 : i32
    %c0_i32_0 = arith.constant 0 : i32
    %c0_i32_1 = arith.constant 0 : i32
    return %c0_i32, %c0_i32_0 : i32, i32
  }
  func.func @transform_11(%arg0: i32) -> (i32, i32) {
    %c0_i32 = arith.constant 0 : i32
    %c0_i32_0 = arith.constant 0 : i32
    %c0_i32_1 = arith.constant 0 : i32
    return %c0_i32, %c0_i32_0 : i32, i32
  }
  func.func @transform_12(%arg0: i32) -> (i32, i32, i32) {
    %c0_i32 = arith.constant 0 : i32
    %c0_i32_0 = arith.constant 0 : i32
    %c0_i32_1 = arith.constant 0 : i32
    return %arg0, %c0_i32, %c0_i32_0 : i32, i32, i32
  }
}

</mosaic_0001>

<bundles_post_ra>
// kernel: transformer_block.1
= control target key start
LH: loop header
LB: loop body
LE: loop exit
PB: predicated region body
PF: predicated region fallthrough
CT: control target
= control target key end

     0   :  { %s1637_s0 = inlined_call_operand.vmem [shape: bf16[2,8,32], index: 0, kind: input, shape index: {}]   ;;  %s1638_s1 = inlined_call_operand.vmem [shape: f32[1,32], index: 1, kind: input, shape index: {}]   ;;  %s1639_s2 = inlined_call_operand.vmem [shape: f32[1,32], index: 2, kind: input, shape index: {}]   ;;  %s1640_s3 = inlined_call_operand.vmem [shape: bf16[32,96], index: 3, kind: input, shape index: {}]   ;;  %s1641_s4 = inlined_call_operand.vmem [shape: bf16[32,32], index: 4, kind: input, shape index: {}]   ;;  %s1642_s5 = inlined_call_operand.vmem [shape: f32[1,32], index: 5, kind: input, shape index: {}]   ;;  %s1643_s6 = inlined_call_operand.vmem [shape: f32[1,32], index: 6, kind: input, shape index: {}]   ;;  %s1644_s7 = inlined_call_operand.vmem [shape: f32[1,32], index: 7, kind: input, shape index: {}]   ;;  %s1645_s8 = inlined_call_operand.vmem [shape: bf16[32,128], index: 8, kind: input, shape index: {}]   ;;  %s1646_s9 = inlined_call_operand.vmem [shape: f32[1,128], index: 9, kind: input, shape index: {}]   ;;  %s1647_s10 = inlined_call_operand.vmem [shape: bf16[128,32], index: 10, kind: input, shape index: {}]   ;;  %s1648_s11 = inlined_call_operand.vmem [shape: f32[1,32], index: 11, kind: input, shape index: {}]   ;;  %s1649_s12 = inlined_call_operand.hbm [shape: bf16[2,8,32], index: 12, kind: output, shape index: {}]  }
   0x1   :  { %1650 = sst [smem:[#allocation5_spill]] %s1637_s0 }
   0x2   :  { %1651 = sst [smem:[#allocation6_spill]] %s1638_s1 }
   0x3   :  { %17 = vsyncpa [#allocation3], 0 }
   0x4   :  { %19 = vsyncpa [#allocation3 + $0x1], 0  ;;  %s1391_s21 = smov 0   ;;  %s1393_s22 = smov 0  }
   0x5   :  { %s1395_s23 = smov 0   ;;  %s1397_s24 = smov 0  }
   0x6 LB: > { %s1412_s25 = sadd.s32 4294967295, %s1309_s24   ;;  %s1073_s26 = sadd.s32 4294967294, %s1309_s24   ;;  %s1309_s24 = sphi %s1397_s24, %s1659_s24   ;;  %s1305_s23 = sphi %s1395_s23, %s1658_s23   ;;  %s1301_s22 = sphi %s1393_s22, %s1657_s22   ;;  %s1297_s21 = sphi %s1391_s21, %s1656_s21  }
   0x7   : > { %s1416_s27 = sadd.s32 1, %s1309_s24   ;;  %s289_s28 = sadd.s32 1, %s1305_s23 }
   0x8   : > { %s286_s29 = ssub.s32 %s1309_s24, %s1416_s27  ;;  %p299_p0 = scmp.ne.s32.totalorder %s1305_s23, %s1301_s22 }
   0x9   : > { %p287_p1 = scmp.eq.s32.totalorder %s286_s29, 0  ;;  %p300_p2 = scmp.eq.s32.totalorder %s1412_s25, 1 }
   0xa   : > { %p305_p3 = scmp.ne.s32.totalorder %s1301_s22, %s1297_s21  ;;  %p306_p4 = scmp.eq.s32.totalorder %s1073_s26, 1 }
   0xb   : > { %s1427_s30 = scalar_select %p287_p1, %s1305_s23, %s289_s28  }
   0xc   : > { %p1429_p5 = por %p300_p2, %p299_p0  ;;  %p1433_p6 = por %p306_p4, %p305_p3 }
   0xd   : > { %p1076_p7 = scmp.ge.s32.totalorder %s1309_s24, 1  ;;  %p364_p8 = scmp.lt.s32.totalorder %s1309_s24, 3 }
   0xf   : > { %p365_p9 = pnand %p1076_p7, %p364_p8 }
  0x10   : > { %p405_p10 = scmp.lt.s32.totalorder (!%p365_p9), %s1412_s25, 1  ;;  %s1654_s0 = sld [smem:[#allocation5_spill]] (!%p365_p9) }
  0x11   : > { %368 = sbr.rel (%p365_p9) target bundleno = 2426 (0x97a), region = 68  ;;  %s1655_s1 = sld [smem:[#allocation6_spill]] (!%p365_p9) }
  0x12   : > { %s1313_s20 = smov (!%p365_p9), 64   ;;  %s1314_s26 = smov (!%p365_p9), 96  }
  0x13   : > { %s1315_s28 = smov (!%p365_p9), 72   ;;  %s1316_s29 = smov (!%p365_p9), 80  }
  0x14   : > { %s1319_s17 = smov (!%p365_p9), 112   ;;  %s1320_s18 = smov (!%p365_p9), 40  }
  0x16   : > { %s406_s15 = scalar_select %p405_p10, %s1412_s25, 1  ;;  %vm414_vm0 = vcmask 261120   ;;  %v1311_v3 = vmov 32.0   ;;  %v1151_v15 = vld [vmem:[%s1640_s3 + $0x8] sm:$0xff]  ;;  %v1150_v16 = vld [vmem:[%s1640_s3] sm:$0xff]  ;;  %vm548_vm5 = vcmask 1043456   ;;  %v486_v48 = vlaneseq }
  0x17   : > { %1225 = vrcp.f32 %v1311_v3  ;;  %478 = vmatpush.bf16.msra.mxu0 %v1151_v15  ;;  %v1218_v26 = vld [vmem:[%s1655_s1] ss:$0 sm:$0xff]  ;;  %vm496_vm6 = vcmask 64512  }
  0x18   : > { %s1078_s16 = sshll.u32 %s406_s15, 2  ;;  %v1219_v29 = vld [vmem:[%s1639_s2] ss:$0 sm:$0xff]  ;;  %v1480_v49 = vshrl.u32 %v486_v48, 7  ;;  %v1482_v50 = vand.u32 127, %v486_v48  ;;  %s1317_s15 = smov 120  }
  0x19   : > { %s408_s19 = scalar_lea.vmem %s1654_s0, %s1078_s16  ;;  %s1318_s16 = smov 104  }
  0x1a   : > { %v410_v0 = vld [vmem:[%s408_s19] sm:$0xf]  ;;  %s1312_s19 = smov 88   ;;  %vm490_vm7 = vcmp.ge.s32.totalorder %v1480_v49, %v1482_v50 }
  0x1b   : > { %v1444_v1 = vunpack.c.l.bf16 %v410_v0  ;;  %479 = vmatpush.bf16.msra.mxu0 %v1150_v16 }
  0x1d   : > { %v415_v2 = vsel %vm414_vm0, %v1444_v1, 0.0  ;;  %v1226_v4 = vpop.eup %1225 }
  0x1e   : > { %416 = vadd.xlane.f32.xlu0 %v415_v2  ;;  %v419_v5 = vmul.f32 32.0, %v1226_v4  ;;  %vm423_vm1 = vweird.f32 %v1226_v4 }
  0x20   : > { %v420_v6 = vsub.f32 1.0, %v419_v5 }
  0x22   : > { %v421_v7 = vmul.f32 %v1226_v4, %v420_v6 }
  0x24   : > { %v422_v8 = vadd.f32 %v1226_v4, %v421_v7 }
  0x26   : > { %v1448_v9 = vsel %vm423_vm1, %v1226_v4, %v422_v8 }
  0x91   : > { %v417_v10 = vpop.xlane.xlu0 %416 }
  0x92   : > { %v425_v11 = vmul.f32 %v1448_v9, %v417_v10 }
  0x94   : > { %v426_v12 = vsub.f32 %v1444_v1, %v425_v11 }
  0x96   : > { %v427_v13 = vmul.f32 %v426_v12, %v426_v12 }
  0x98   : > { %v428_v14 = vsel %vm414_vm0, %v427_v13, 0.0 }
  0x99   : > { %429 = vadd.xlane.f32.xlu0 %v428_v14 }
 0x10c   : > { %v430_v17 = vpop.xlane.xlu0 %429 }
 0x10d   : > { %v431_v18 = vmul.f32 %v430_v17, %v1448_v9 }
 0x10f   : > { %v432_v19 = vadd.f32 1e-05, %v431_v18 }
 0x111   : > { %1227 = vrsqrt.f32 %v432_v19  ;;  %vm439_vm3 = vweird.f32 %v432_v19 }
 0x117   : > { %v1228_v20 = vpop.eup %1227 }
 0x118   : > { %v434_v21 = vmul.f32 %v1228_v20, %v432_v19  ;;  %vm440_vm2 = vweird.f32 %v1228_v20 }
 0x119   : > { %vm441_vm4 = vmor %vm439_vm3, %vm440_vm2 }
 0x11a   : > { %v435_v22 = vmul.f32 %v1228_v20, %v434_v21 }
 0x11c   : > { %v436_v23 = vmul.f32 0.5, %v435_v22 }
 0x11e   : > { %v437_v24 = vsub.f32 1.5, %v436_v23 }
 0x120   : > { %v438_v25 = vmul.f32 %v1228_v20, %v437_v24 }
 0x122   : > { %v442_v27 = vsel %vm441_vm4, %v1228_v20, %v438_v25 }
 0x123   : > { %v443_v28 = vmul.f32 %v442_v27, %v426_v12 }
 0x125   : > { %v447_v30 = vmul.f32 %v1218_v26, %v443_v28 }
 0x127   : > { %v451_v31 = vadd.f32 %v1219_v29, %v447_v30 }
 0x129   : > { %v452_v32 = vpack.c.bf16 %v451_v31, %v451_v31 }
 0x12b   : > { %1087 = vmatmul.msk.bf16.vlgmr.msra.gmra.mxu0 %vm414_vm0, %v452_v32 }
 0x1a8   : > { %v481_v33 = vpop.f32.mrf.mxu0 }
 0x1a9   : > { %v485_v34 = vpack.c.bf16 %v481_v33, %v481_v33 }
 0x1ab   : > { %v492_v35 = vunpack.c.l.b16 %v485_v34 }
 0x1ad   : > { %v1467_v36 = vpack.c.b16 %v492_v35, %v492_v35 }
 0x1af   : > { %568 = vrot.lane.b32.xlu0 %v1467_v36, %s1312_s19  ;;  %543 = vrot.lane.b32.xlu2 %v1467_v36, %s1313_s20  ;;  %s1321_s19 = smov 56   ;;  %s1322_s20 = smov 48  }
 0x1b0   : > { %494 = vrot.lane.b32.xlu1 %v1467_v36, %s1314_s26  ;;  %v483_v37 = vpop.f32.mrf.mxu0  ;;  %s1323_s26 = smov 8  }
 0x1b7   : > { %712 = vrot.lane.b32.xlu0 %v1467_v36, %s1315_s28  ;;  %s1324_s28 = smov 16  }
 0x1bf   : > { %640 = vrot.lane.b32.xlu0 %v1467_v36, %s1316_s29  ;;  %s1325_s29 = smov 24  }
 0x209   : > { %v544_v38 = vpop.permute.xlu2 %543 }
 0x20a   : > { %v550_v39 = vsel %vm548_vm5, %v544_v38, 0 }
 0x20b   : > { %559 = vmatpush.bf16.msra.mxu2 %v550_v39 }
 0x221   : > { %v569_v40 = vpop.permute.xlu0 %568 }
 0x222   : > { %v495_v41 = vpop.permute.xlu1 %494  ;;  %v574_v42 = vsel %vm496_vm6, %v569_v40, 0 }
 0x223   : > { %v501_v43 = vsel %vm496_vm6, %v495_v41, 0  ;;  %583 = vmatpush.bf16.xpose.msrb.mxu2 %v574_v42 }
 0x224   : > { %510 = vmatpush.bf16.xpose.msra.mxu1 %v501_v43 }
 0x229   : > { %v713_v44 = vpop.permute.xlu0 %712 }
 0x22a   : > { %v718_v45 = vsel %vm496_vm6, %v713_v44, 0 }
 0x22b   : > { %1088 = vmatmul.msk.bf16.vlgmr.msra.gmra.mxu1 %vm496_vm6, %v485_v34  ;;  %727 = vmatpush.bf16.xpose.msra.mxu3 %v718_v45 }
 0x231   : > { %v641_v46 = vpop.permute.xlu0 %640 }
 0x232   : > { %v646_v47 = vsel %vm496_vm6, %v641_v46, 0 }
 0x233   : > { %655 = vmatpush.bf16.xpose.msrb.mxu0 %v646_v47 }
 0x2a8   : > { %v512_v51 = vpop.f32.mrf.mxu1 }
 0x2a9   : > { %v516_v52 = vmul.f32 0.35355338, %v512_v51 }
 0x2ab   : > { %v517_v53 = vsel %vm490_vm7, %v516_v52, -1e+30 }
 0x2ac   : > { %v518_v54 = vsel %vm496_vm6, %v517_v53, -inf }
 0x2ad   : > { %519 = vmax.xlane.f32.xlu1 %v518_v54 }
 0x2b0   : > { %v514_v55 = vpop.f32.mrf.mxu1 }
 0x320   : > { %v520_v56 = vpop.xlane.xlu1 %519 }
 0x321   : > { %v521_v57 = vsub.f32 %v517_v53, %v520_v56 }
 0x323   : > { %v522_v58 = vmul.f32 1.442695, %v521_v57 }
 0x325   : > { %1229 = vpow2.f32 %v522_v58 }
 0x32b   : > { %v1230_v59 = vpop.eup %1229 }
 0x32c   : > { %v524_v60 = vsel %vm496_vm6, %v1230_v59, 0.0 }
 0x32d   : > { %525 = vadd.xlane.f32.xlu2 %v524_v60 }
 0x345   : > { %566 = vrot.lane.b32.xlu2 %v1467_v36, %s1317_s15 }
 0x34d   : > { %710 = vrot.lane.b32.xlu2 %v1467_v36, %s1318_s16 }
 0x355   : > { %638 = vrot.lane.b32.xlu2 %v1467_v36, %s1319_s17 }
 0x3a0   : > { %v526_v61 = vpop.xlane.xlu2 %525 }
 0x3a1   : > { %1231 = vrcp.f32 %v526_v61  ;;  %v538_v3 = vand.u32 2147483648, %v526_v61  ;;  %v536_v5 = vand.u32 2147483647, %v526_v61  ;;  %vm532_vm9 = vweird.f32 %v526_v61 }
 0x3a3   : > { %v539_v7 = vor.u32 1.1754944e-38, %v538_v3  ;;  %vm537_vm11 = vcmp.eq.f32.partialorder %v536_v5, 8.507059e+37 }
 0x3a7   : > { %v1232_v62 = vpop.eup %1231 }
 0x3a8   : > { %v528_v63 = vmul.f32 %v1232_v62, %v526_v61  ;;  %v567_v0 = vpop.permute.xlu2 %566  ;;  %vm533_vm8 = vweird.f32 %v1232_v62 }
 0x3a9   : > { %vm534_vm10 = vmor %vm532_vm9, %vm533_vm8 }
 0x3aa   : > { %v529_v2 = vsub.f32 1.0, %v528_v63 }
 0x3ac   : > { %v530_v4 = vmul.f32 %v1232_v62, %v529_v2 }
 0x3ae   : > { %v531_v6 = vadd.f32 %v1232_v62, %v530_v4 }
 0x3b0   : > { %v711_v8 = vpop.permute.xlu2 %710  ;;  %v535_v10 = vsel %vm534_vm10, %v1232_v62, %v531_v6 }
 0x3b1   : > { %1094 = vmatmul.msk.bf16.vlgmr.msra.gmra.mxu3 %vm496_vm6, %v711_v8  ;;  %v540_v11 = vsel %vm537_vm11, %v539_v7, %v535_v10  ;;  %vm803_vm11 = vcmask 195584  }
 0x3b2   : > { %v541_v12 = vmul.f32 %v1230_v59, %v540_v11 }
 0x3b4   : > { %v542_v13 = vpack.c.bf16 %v541_v12, %v541_v12 }
 0x3b6   : > { %1089 = vmatmul.msk.bf16.vlgmr.msra.gmra.mxu2 %vm496_vm6, %v542_v13 }
 0x3b8   : > { %v639_v14 = vpop.permute.xlu2 %638 }
 0x3b9   : > { %1092 = vmatmul.msk.bf16.vlgmr.msrb.gmra.mxu0 %vm496_vm6, %v639_v14 }
 0x3c6   : > { %1090 = vmatmul.msk.bf16.vlgmr.msrb.gmra.mxu2 %vm496_vm6, %v567_v0 }
 0x434   : > { %v729_v15 = vpop.f32.mrf.mxu3 }
 0x435   : > { %v733_v16 = vmul.f32 0.35355338, %v729_v15 }
 0x436   : > { %v657_v17 = vpop.f32.mrf.mxu0 }
 0x437   : > { %v661_v18 = vmul.f32 0.35355338, %v657_v17  ;;  %v734_v19 = vsel %vm490_vm7, %v733_v16, -1e+30 }
 0x438   : > { %v735_v20 = vsel %vm496_vm6, %v734_v19, -inf }
 0x439   : > { %v1502_v21 = vpop.f32.mrf.mxu2  ;;  %736 = vmax.xlane.f32.xlu0 %v735_v20  ;;  %v662_v22 = vsel %vm490_vm7, %v661_v18, -1e+30 }
 0x43a   : > { %v663_v23 = vsel %vm496_vm6, %v662_v22, -inf }
 0x43b   : > { %664 = vmax.xlane.f32.xlu2 %v663_v23 }
 0x43c   : > { %v731_v24 = vpop.f32.mrf.mxu3 }
 0x43e   : > { %v659_v25 = vpop.f32.mrf.mxu0 }
 0x441   : > { %v563_v26 = vpop.f32.mrf.mxu2 }
 0x449   : > { %v585_v27 = vpop.f32.mrf.mxu2 }
 0x44a   : > { %v589_v39 = vmul.f32 0.35355338, %v585_v27 }
 0x44c   : > { %v590_v41 = vsel %vm490_vm7, %v589_v39, -1e+30 }
 0x44d   : > { %v591_v42 = vsel %vm496_vm6, %v590_v41, -inf }
 0x451   : > { %v587_v28 = vpop.f32.mrf.mxu2 }
 0x453   : > { %760 = vrot.lane.b32.xlu2 %v1467_v36, %s1320_s18 }
 0x4ac   : > { %v737_v29 = vpop.xlane.xlu0 %736 }
 0x4ad   : > { %v738_v30 = vsub.f32 %v734_v19, %v737_v29 }
 0x4ae   : > { %v665_v31 = vpop.xlane.xlu2 %664 }
 0x4af   : > { %v739_v32 = vmul.f32 1.442695, %v738_v30  ;;  %v666_v33 = vsub.f32 %v662_v22, %v665_v31 }
 0x4b1   : > { %1233 = vpow2.f32 %v739_v32  ;;  %v667_v34 = vmul.f32 1.442695, %v666_v33 }
 0x4b3   : > { %1235 = vpow2.f32 %v667_v34 }
 0x4b6   : > { %v761_v51 = vpop.permute.xlu2 %760 }
 0x4b7   : > { %v1509_v35 = vpop.eup %1233  ;;  %v766_v50 = vsel %vm548_vm5, %v761_v51, 0 }
 0x4b8   : > { %v741_v37 = vsel %vm496_vm6, %v1509_v35, 0.0 }
 0x4b9   : > { %v1513_v38 = vpop.eup %1235  ;;  %742 = vadd.xlane.f32.xlu1 %v741_v37 }
 0x4ba   : > { %v669_v40 = vsel %vm496_vm6, %v1513_v38, 0.0 }
 0x4bb   : > { %670 = vadd.xlane.f32.xlu0 %v669_v40 }
 0x4c1   : > { %592 = vmax.xlane.f32.xlu1 %v591_v42 }
 0x4da   : > { %616 = vrot.lane.b32.xlu1 %v1467_v36, %s1321_s19 }
 0x52c   : > { %v1522_v43 = vpop.xlane.xlu1 %742 }
 0x52d   : > { %v755_v19 = vand.u32 2147483648, %v1522_v43  ;;  %vm749_vm8 = vweird.f32 %v1522_v43  ;;  %v753_v22 = vand.u32 2147483647, %v1522_v43 }
 0x52e   : > { %v671_v53 = vpop.xlane.xlu0 %670 }
 0x52f   : > { %v683_v5 = vand.u32 2147483648, %v671_v53  ;;  %vm677_vm15 = vweird.f32 %v671_v53  ;;  %v681_v7 = vand.u32 2147483647, %v671_v53  ;;  %v756_v26 = vor.u32 1.1754944e-38, %v755_v19 }
 0x530   : > { %vm754_vm10 = vcmp.eq.f32.partialorder %v753_v22, 8.507059e+37  ;;  %v1222_v22 = vld [vmem:[%s1644_s7] ss:$0 sm:$0xff] }
 0x531   : > { %v684_v14 = vor.u32 1.1754944e-38, %v683_v5  ;;  %vm682_vm4 = vcmp.eq.f32.partialorder %v681_v7, 8.507059e+37 }
 0x534   : > { %v593_v44 = vpop.xlane.xlu1 %592 }
 0x535   : > { %v594_v45 = vsub.f32 %v590_v41, %v593_v44 }
 0x537   : > { %v595_v46 = vmul.f32 1.442695, %v594_v45 }
 0x539   : > { %1237 = vpow2.f32 %v595_v46 }
 0x53a   : > { %1239 = vrcp.f32 %v671_v53 }
 0x53b   : > { %1241 = vrcp.f32 %v1522_v43 }
 0x53f   : > { %v1238_v47 = vpop.eup %1237 }
 0x540   : > { %v597_v48 = vsel %vm496_vm6, %v1238_v47, 0.0  ;;  %v1240_v54 = vpop.eup %1239 }
 0x541   : > { %598 = vadd.xlane.f32.xlu1 %v597_v48  ;;  %v673_v56 = vmul.f32 %v1240_v54, %v671_v53  ;;  %v1242_v58 = vpop.eup %1241  ;;  %vm678_vm13 = vweird.f32 %v1240_v54  ;;  %v1152_v48 = vld [vmem:[%s1641_s4] sm:$0xff] }
 0x542   : > { %v745_v62 = vmul.f32 %v1242_v58, %v1522_v43  ;;  %vm679_vm2 = vmor %vm677_vm15, %vm678_vm13  ;;  %vm750_vm7 = vweird.f32 %v1242_v58 }
 0x543   : > { %v674_v57 = vsub.f32 1.0, %v673_v56  ;;  %vm751_vm9 = vmor %vm749_vm8, %vm750_vm7  ;;  %v1220_v56 = vld [vmem:[%s1642_s5] ss:$0 sm:$0xff] }
 0x544   : > { %v746_v4 = vsub.f32 1.0, %v745_v62 }
 0x545   : > { %v675_v61 = vmul.f32 %v1240_v54, %v674_v57 }
 0x546   : > { %v747_v13 = vmul.f32 %v1242_v58, %v746_v4 }
 0x547   : > { %v676_v3 = vadd.f32 %v1240_v54, %v675_v61 }
 0x548   : > { %v748_v18 = vadd.f32 %v1242_v58, %v747_v13 }
 0x549   : > { %v680_v12 = vsel %vm679_vm2, %v1240_v54, %v676_v3  ;;  %v1163_v3 = vld [vmem:[%s1647_s10 + $0x38] sm:$0xff] }
 0x54a   : > { %v685_v17 = vsel %vm682_vm4, %v684_v14, %v680_v12  ;;  %v752_v25 = vsel %vm751_vm9, %v1242_v58, %v748_v18  ;;  %981 = vmatpush.bf16.msrb.mxu3 %v1163_v3  ;;  %v1221_v18 = vld [vmem:[%s1643_s6] ss:$0 sm:$0xff] }
 0x54b   : > { %v686_v20 = vmul.f32 %v1513_v38, %v685_v17  ;;  %v757_v28 = vsel %vm754_vm10, %v756_v26, %v752_v25  ;;  %v1157_v26 = vld [vmem:[%s1647_s10 + $0x8] sm:$0xff] }
 0x54c   : > { %v617_v52 = vpop.permute.xlu1 %616  ;;  %v758_v29 = vmul.f32 %v1509_v35, %v757_v28  ;;  %v1223_v28 = vld [vmem:[%s1646_s9] ss:$0 sm:$0xff] }
 0x54d   : > { %v622_v49 = vsel %vm548_vm5, %v617_v52, 0  ;;  %v687_v27 = vpack.c.bf16 %v686_v20, %v686_v20 }
 0x54e   : > { %631 = vmatpush.bf16.msra.mxu2 %v622_v49  ;;  %v759_v30 = vpack.c.bf16 %v758_v29, %v758_v29  ;;  %v565_v49 = vpack.c.bf16 %v1502_v21, %v1502_v21 }
 0x552   : > { %775 = vmatpush.bf16.msrb.mxu2 %v766_v50 }
 0x55a   : > { %688 = vrot.lane.b32.xlu1 %v1467_v36, %s1322_s20  ;;  %s402_s20 = sand.u32 1, %s1301_s22  }
 0x5b4   : > { %v599_v55 = vpop.xlane.xlu1 %598 }
 0x5b5   : > { %1243 = vrcp.f32 %v599_v55  ;;  %v611_v0 = vand.u32 2147483648, %v599_v55  ;;  %v609_v36 = vand.u32 2147483647, %v599_v55  ;;  %vm605_vm14 = vweird.f32 %v599_v55 }
 0x5b7   : > { %v612_v8 = vor.u32 1.1754944e-38, %v611_v0  ;;  %vm610_vm3 = vcmp.eq.f32.partialorder %v609_v36, 8.507059e+37  ;;  %v1155_v36 = vld [vmem:[%s1645_s8 + $0x8] sm:$0xff] }
 0x5bb   : > { %v1244_v59 = vpop.eup %1243 }
 0x5bc   : > { %v601_v60 = vmul.f32 %v1244_v59, %v599_v55  ;;  %vm606_vm12 = vweird.f32 %v1244_v59 }
 0x5bd   : > { %vm607_vm1 = vmor %vm605_vm14, %vm606_vm12 }
 0x5be   : > { %v602_v63 = vsub.f32 1.0, %v601_v60 }
 0x5c0   : > { %v603_v2 = vmul.f32 %v1244_v59, %v602_v63 }
 0x5c2   : > { %v604_v6 = vadd.f32 %v1244_v59, %v603_v2 }
 0x5c4   : > { %v608_v10 = vsel %vm607_vm1, %v1244_v59, %v604_v6  ;;  %v1162_v6 = vld [vmem:[%s1647_s10 + $0x30] sm:$0xff] }
 0x5c5   : > { %v613_v11 = vsel %vm610_vm3, %v612_v8, %v608_v10  ;;  %982 = vmatpush.bf16.msrb.mxu3 %v1162_v6  ;;  %v1161_v8 = vld [vmem:[%s1647_s10 + $0x28] sm:$0xff]  ;;  %v1160_v10 = vld [vmem:[%s1647_s10 + $0x20] sm:$0xff] }
 0x5c6   : > { %v614_v15 = vmul.f32 %v1238_v47, %v613_v11  ;;  %v1153_v47 = vld [vmem:[%s1641_s4 + $0x8] sm:$0xff] }
 0x5c7   : > { %834 = vmatpush.bf16.msra.mxu0 %v1153_v47 }
 0x5c8   : > { %v615_v16 = vpack.c.bf16 %v614_v15, %v614_v15  ;;  %v1158_v15 = vld [vmem:[%s1647_s10 + $0x10] sm:$0xff] }
 0x5c9   : > { %983 = vmatpush.bf16.msrb.mxu3 %v1161_v8 }
 0x5ca   : > { %1091 = vmatmul.msk.bf16.vlgmr.msra.gmra.mxu2 %vm496_vm6, %v615_v16 }
 0x5cb   : > { %835 = vmatpush.bf16.msra.mxu0 %v1152_v48 }
 0x5cc   : > { %v689_v23 = vpop.permute.xlu1 %688 }
 0x5cd   : > { %v694_v24 = vsel %vm548_vm5, %v689_v23, 0  ;;  %vm800_vm5 = vcmask 130048   ;;  %984 = vmatpush.bf16.msrb.mxu3 %v1160_v10 }
 0x5ce   : > { %703 = vmatpush.bf16.msrb.mxu1 %v694_v24 }
 0x5d1   : > { %1093 = vmatmul.msk.bf16.vlgmr.msrb.gmra.mxu1 %vm496_vm6, %v687_v27  ;;  %v1156_v27 = vld [vmem:[%s1647_s10] sm:$0xff] }
 0x5d2   : > { %904 = vmatpush.bf16.msra.mxu1 %v1155_v36 }
 0x5da   : > { %1095 = vmatmul.msk.bf16.vlgmr.msrb.gmra.mxu2 %vm496_vm6, %v759_v30 }
 0x64d   : > { %v633_v31 = vpop.f32.mrf.mxu2 }
 0x64e   : > { %v637_v32 = vpack.c.bf16 %v633_v31, %v633_v31  ;;  %v705_v33 = vpop.f32.mrf.mxu1 }
 0x64f   : > { %v709_v34 = vpack.c.bf16 %v705_v33, %v705_v33 }
 0x650   : > { %v783_v37 = vunpack.c.l.b16 %v637_v32 }
 0x651   : > { %v788_v38 = vunpack.c.l.b16 %v709_v34  ;;  %v1224_v34 = vld [vmem:[%s1648_s11] ss:$0 sm:$0xff] }
 0x652   : > { %v784_v39 = vpack.c.b16 %v783_v37, %v783_v37 }
 0x653   : > { %v789_v40 = vpack.c.b16 %v788_v38, %v788_v38 }
 0x654   : > { %785 = vrot.lane.b32.xlu0 %v784_v39, %s1323_s26  ;;  %s1077_s26 = sshll.u32 %s402_s20, 2 }
 0x655   : > { %v635_v41 = vpop.f32.mrf.mxu2  ;;  %790 = vrot.lane.b32.xlu1 %v789_v40, %s1324_s28  ;;  %s1147_s28 = sshll.u32 %s1412_s25, 2  ;;  %s404_s18 = scalar_lea.vmem [#allocation2], %s1077_s26 }
 0x656   : > { %v707_v42 = vpop.f32.mrf.mxu1  ;;  %s1009_s0 = scalar_lea.hbm %s1649_s12, %s1147_s28  ;;  %s1011_s19 = sshll.u32 %s404_s18, 4  ;;  %s1012_s19 = int_to_ptr.vmem [resolvable:$true] %s1011_s19 }
 0x657   : > { %s1013_s1 = sshll.u32 %s1009_s0, 4  ;;  %s999_s25 = scalar_lea.sflag [#allocation3], %s402_s20  ;;  %s1014_s1 = int_to_ptr.hbm [resolvable:$true] %s1013_s1 }
 0x658   : > { %s1267_s0 = scalar_lea.hbm %s1649_s12, 8 }
 0x65d   : > { %v777_v43 = vpop.f32.mrf.mxu2 }
 0x65e   : > { %v781_v44 = vpack.c.bf16 %v777_v43, %v777_v43 }
 0x660   : > { %v793_v35 = vunpack.c.l.b16 %v781_v44 }
 0x662   : > { %v794_v45 = vpack.c.b16 %v793_v35, %v793_v35 }
 0x664   : > { %795 = vrot.lane.b32.xlu1 %v794_v45, %s1325_s29  ;;  %s1261_s29 = sshra.s32 %s1014_s1, 4  ;;  %s1262_s29 = int_to_ptr.hbm [resolvable:$true] %s1261_s29 }
 0x665   : > { %v779_v46 = vpop.f32.mrf.mxu2  ;;  %s1263_s15 = scalar_lea.hbm %s1262_s29, 4  ;;  %p1268_p0 = scmp.lt.s32.totalorder %s1262_s29, %s1649_s12 }
 0x666   : > { %p1264_p11 = scmp.ne.s32.totalorder %s1262_s29, %s1263_s15  ;;  %p1269_p1 = scmp.lt.s32.totalorder %s1267_s0, %s1263_s15 }
 0x668   : > { %p1265_p12 = pnand %p1264_p11, %p1429_p5  ;;  %p1270_p2 = por %p1269_p1, %p1268_p0 }
 0x66a   : > { %p1266_p13 = pneg %p1265_p12 }
 0x66c   : > { %p1271_p3 = pnand %p1270_p2, %p1266_p13 }
 0x6c6   : > { %v786_v52 = vpop.permute.xlu0 %785 }
 0x6c7   : > { %v791_v51 = vpop.permute.xlu1 %790  ;;  %v799_v50 = vsel %vm496_vm6, %v565_v49, %v786_v52 }
 0x6c8   : > { %v802_v53 = vsel %vm800_vm5, %v799_v50, %v791_v51 }
 0x6d6   : > { %v796_v54 = vpop.permute.xlu1 %795 }
 0x6d7   : > { %v805_v55 = vsel %vm803_vm11, %v802_v53, %v796_v54 }
 0x6d8   : > { %1104 = vmatmul.msk.bf16.vlgmr.msra.gmra.mxu0 %vm414_vm0, %v805_v55 }
 0x755   : > { %v837_v57 = vpop.f32.mrf.mxu0 }
 0x756   : > { %v838_v58 = vadd.f32 %v1220_v56, %v837_v57 }
 0x758   : > { %v1553_v59 = vadd.f32 %v838_v58, %v1444_v1  ;;  %v1154_v1 = vld [vmem:[%s1645_s8] sm:$0xff] }
 0x759   : > { %905 = vmatpush.bf16.msra.mxu1 %v1154_v1 }
 0x75a   : > { %v844_v21 = vsel %vm414_vm0, %v1553_v59, 0.0 }
 0x75b   : > { %845 = vadd.xlane.f32.xlu2 %v844_v21 }
 0x75d   : > { %v839_v60 = vpop.f32.mrf.mxu0 }
 0x7ce   : > { %v846_v61 = vpop.xlane.xlu2 %845 }
 0x7cf   : > { %v847_v62 = vmul.f32 %v846_v61, %v1448_v9 }
 0x7d1   : > { %v848_v63 = vsub.f32 %v1553_v59, %v847_v62 }
 0x7d3   : > { %v849_v0 = vmul.f32 %v848_v63, %v848_v63 }
 0x7d5   : > { %v850_v2 = vsel %vm414_vm0, %v849_v0, 0.0 }
 0x7d6   : > { %851 = vadd.xlane.f32.xlu0 %v850_v2 }
 0x849   : > { %v852_v4 = vpop.xlane.xlu0 %851 }
 0x84a   : > { %v853_v5 = vmul.f32 %v852_v4, %v1448_v9  ;;  %v1159_v9 = vld [vmem:[%s1647_s10 + $0x18] sm:$0xff] }
 0x84b   : > { %985 = vmatpush.bf16.msrb.mxu3 %v1159_v9 }
 0x84c   : > { %v854_v7 = vadd.f32 1e-05, %v853_v5 }
 0x84e   : > { %1245 = vrsqrt.f32 %v854_v7  ;;  %vm861_vm12 = vweird.f32 %v854_v7 }
 0x84f   : > { %986 = vmatpush.bf16.msrb.mxu3 %v1158_v15 }
 0x853   : > { %987 = vmatpush.bf16.msrb.mxu3 %v1157_v26 }
 0x854   : > { %v1246_v11 = vpop.eup %1245 }
 0x855   : > { %v856_v12 = vmul.f32 %v1246_v11, %v854_v7  ;;  %vm862_vm6 = vweird.f32 %v1246_v11 }
 0x856   : > { %vm863_vm13 = vmor %vm861_vm12, %vm862_vm6 }
 0x857   : > { %v857_v13 = vmul.f32 %v1246_v11, %v856_v12  ;;  %988 = vmatpush.bf16.msrb.mxu3 %v1156_v27 }
 0x859   : > { %v858_v14 = vmul.f32 0.5, %v857_v13 }
 0x85b   : > { %v859_v16 = vsub.f32 1.5, %v858_v14 }
 0x85d   : > { %v860_v17 = vmul.f32 %v1246_v11, %v859_v16 }
 0x85f   : > { %v864_v19 = vsel %vm863_vm13, %v1246_v11, %v860_v17 }
 0x860   : > { %v865_v20 = vmul.f32 %v864_v19, %v848_v63 }
 0x862   : > { %v869_v23 = vmul.f32 %v1221_v18, %v865_v20 }
 0x864   : > { %v873_v24 = vadd.f32 %v1222_v22, %v869_v23 }
 0x866   : > { %v874_v25 = vpack.c.bf16 %v873_v24, %v873_v24 }
 0x868   : > { %1113 = vmatmul.msk.bf16.vlgmr.msra.gmra.mxu1 %vm414_vm0, %v874_v25  ;;  %vm996_vm0 = vcmask 257024  }
 0x8e5   : > { %v907_v29 = vpop.f32.mrf.mxu1 }
 0x8e6   : > { %v908_v30 = vadd.f32 %v1223_v28, %v907_v29 }
 0x8e8   : > { %v911_v31 = vmax.f32 %v908_v30, 0.0 }
 0x8ea   : > { %v912_v32 = vpack.c.bf16 %v911_v31, %v911_v31 }
 0x8ec   : > { %989 = vmatmul.bf16.vlgmr.msrb.gmra.mxu3 %v912_v32 }
 0x8ed   : > { %v909_v33 = vpop.f32.mrf.mxu1 }
 0x96f   : > { %v990_v37 = vpop.f32.mrf.mxu3 }
 0x970   : > { %v991_v38 = vadd.f32 %v1224_v34, %v990_v37 }
 0x972   : > { %v994_v39 = vadd.f32 %v991_v38, %v1553_v59 }
 0x974   : > { %v995_v40 = vpack.c.bf16 %v994_v39, %v994_v39 }
 0x976   : > { %997 = vst.msk [vmem:[%s404_s18] sm:$0xf] %vm996_vm0, %v995_v40 }
 0x977   : > { %v992_v41 = vpop.f32.mrf.mxu3 }
 0x978   : > { %1274 = shalt.err (!%p1271_p3)
}
 0x979   : > { %1164 = dma.vmem_to_hbm [thread:$0]  (%p1429_p5), %s1012_s19, 64, %s1014_s1, %s999_s25  }
 0x97a PF: > { %p1170_p4 = scmp.ge.s32.totalorder %s1309_s24, 2  ;;  %s1025_s20 = sand.u32 1, %s1297_s21  }
 0x97b   : > { %s1026_s18 = scalar_lea.sflag [#allocation3], %s1025_s20 }
 0x97c   : > { %p1167_p7 = pnand %p1170_p4, %p1433_p6 }
 0x97e   : > { %p1168_p8 = pneg %p1167_p7 }
 0x980   : > { %1292 = dma.done.wait (%p1168_p8), %s1026_s18, 64  }
 0x981   : > { %1294 = vsyncadd (%p1168_p8), %s1026_s18, 4294967232  ;;  %p22_p9 = scmp.ge.s32.totalorder %s1416_s27, 4   ;;  %s1656_s21 = smov %s1301_s22 }
 0x982   : > { %s1657_s22 = smov %s1305_s23  ;;  %s1658_s23 = smov %s1427_s30 }
 0x983   : > { %s1659_s24 = smov %s1416_s27  ;;  %24 = sbr.rel (!%p22_p9) target bundleno = 6 (0x6), region = 103 }
 0x988   :  { %1032 = vsyncpa [#allocation3], 1 }
 0x989   :  { %1034 = vsyncpa [#allocation3 + $0x1], 1 }

</bundles_post_ra>
